<compile_context>
chip_gen: v5e
topology: v5e:2x2
jax: 0.10.0
libtpu: 0.0.40
codegen_flags: <defaults>
</compile_context>

<pallas_src>
import jax
import jax.numpy as jnp
from jax.experimental import pallas as pl
from jax.experimental.pallas import tpu as pltpu


def _round_up(x, m):
    return (x + m - 1) // m * m


def residual_block_kernel(x_ref, w1_ref, b1_ref, w2_ref, b2_ref, o_ref):
    x = x_ref[...]                                    # (tm, Dp), f32
    mxu_dtype = w1_ref.dtype                          # f32 or bf16 (MXU operand dtype)
    h = jnp.dot(x.astype(mxu_dtype), w1_ref[...],
                preferred_element_type=jnp.float32) + b1_ref[...]
    h = jnp.maximum(h, 0.0)                           # ReLU (f32 on VPU)
    h = jnp.dot(h.astype(mxu_dtype), w2_ref[...],
                preferred_element_type=jnp.float32) + b2_ref[...]
    h = jnp.maximum(h, 0.0)                           # ReLU
    o_ref[...] = (x + h).astype(o_ref.dtype)          # residual add


def _vmem_need_bytes(tm, Dp, w_bytes):
    return (2 * Dp * Dp * w_bytes          # W1, W2 (single-buffered, resident)
            + 2 * Dp * 4                   # biases
            + 2 * 2 * tm * Dp * 4          # x + out tiles, double-buffered
            + 2 * tm * Dp * 4)             # live f32 intermediates


def residual_block(x, w1_t, b1, w2_t, b2, *, tm=None, use_bf16_mxu=False):
    """x: (B, S, D); w*_t: (D, D) pre-transposed (kernel computes x @ W); b*: (1, D)."""
    B, S, D = x.shape
    M = B * S

    # Lane-dense padding of the feature dim.
    Dp = _round_up(max(D, 128), 128)
    w_bytes = 2 if use_bf16_mxu else 4

    # Physical VMEM cap (leave headroom for compiler scratch).
    try:
        vmem_cap = pltpu.get_tpu_info().vmem_capacity_bytes - (8 << 20)
    except Exception:
        vmem_cap = 48 << 20                # conservative (fits v7x's 64 MiB)

    # Row-tile selection: target big tiles, multiples of 8, shrink until the
    # working set fits the VMEM budget (but never below one (8,·) vreg row tile).
    if tm is None:
        target = 1024 if use_bf16_mxu else 512
        tm = min(target, _round_up(M, 8))
    tm = max(8, _round_up(tm, 8))
    while tm > 8 and _vmem_need_bytes(tm, Dp, w_bytes) + (8 << 20) > vmem_cap:
        tm = max(8, _round_up(tm // 2, 8))
    Mp = _round_up(M, tm)

    w_dtype = jnp.bfloat16 if use_bf16_mxu else jnp.float32
    x2 = jnp.pad(x.reshape(M, D).astype(jnp.float32), ((0, Mp - M), (0, Dp - D)))
    w1p = jnp.pad(w1_t, ((0, Dp - D), (0, Dp - D))).astype(w_dtype)
    w2p = jnp.pad(w2_t, ((0, Dp - D), (0, Dp - D))).astype(w_dtype)
    b1p = jnp.pad(b1, ((0, 0), (0, Dp - D))).astype(jnp.float32)
    b2p = jnp.pad(b2, ((0, 0), (0, Dp - D))).astype(jnp.float32)

    need = _vmem_need_bytes(tm, Dp, w_bytes)
    vmem_limit = int(min(max(need + (8 << 20), 32 << 20), vmem_cap))

    cost = pl.CostEstimate(
        flops=4 * Mp * Dp * Dp,            # two Dp x Dp matmuls over Mp rows
        transcendentals=0,
        bytes_accessed=(2 * Mp * Dp * 4 + 2 * Dp * Dp * w_bytes + 2 * Dp * 4))

    resident = dict(pipeline_mode=pl.Buffered(1))  # constant index_map -> no 2nd buffer
    out = pl.pallas_call(
        residual_block_kernel,
        out_shape=jax.ShapeDtypeStruct((Mp, Dp), x.dtype),
        grid_spec=pltpu.PrefetchScalarGridSpec(
            num_scalar_prefetch=0,
            grid=(Mp // tm,),
            in_specs=[
                pl.BlockSpec((tm, Dp), lambda i: (i, 0)),              # x row tile
                pl.BlockSpec((Dp, Dp), lambda i: (0, 0), **resident),  # W1^T resident
                pl.BlockSpec((1, Dp),  lambda i: (0, 0), **resident),  # b1
                pl.BlockSpec((Dp, Dp), lambda i: (0, 0), **resident),  # W2^T resident
                pl.BlockSpec((1, Dp),  lambda i: (0, 0), **resident),  # b2
            ],
            out_specs=pl.BlockSpec((tm, Dp), lambda i: (i, 0)),
        ),
        compiler_params=pltpu.CompilerParams(
            dimension_semantics=("parallel",),
            vmem_limit_bytes=vmem_limit),
        cost_estimate=cost,
    )(x2, w1p, b1p, w2p, b2p)

    return out[:M, :D].reshape(B, S, D)


def init_params(key, d_model):
    # Deterministic init mimicking nn.Linear (uniform in [-1/sqrt(d), 1/sqrt(d)]).
    k1, k2, k3, k4 = jax.random.split(key, 4)
    bound = 1.0 / jnp.sqrt(d_model)
    w1 = jax.random.uniform(k1, (d_model, d_model), jnp.float32, -bound, bound)
    b1 = jax.random.uniform(k2, (1, d_model), jnp.float32, -bound, bound)
    w2 = jax.random.uniform(k3, (d_model, d_model), jnp.float32, -bound, bound)
    b2 = jax.random.uniform(k4, (1, d_model), jnp.float32, -bound, bound)
    # Store transposed so the kernel computes x @ W (== PyTorch x @ W.T, W=(out,in)).
    return w1.T, b1, w2.T, b2


def reference(x, w1_t, b1, w2_t, b2):
    h = jnp.maximum(x @ w1_t + b1, 0.0)
    h = jnp.maximum(h @ w2_t + b2, 0.0)
    return x + h


if __name__ == "__main__":
    batch, seq, d_model = 2, 8, 32
    key = jax.random.PRNGKey(0)
    kx, kp = jax.random.split(key)
    x = jax.random.normal(kx, (batch, seq, d_model), jnp.float32)
    w1_t, b1, w2_t, b2 = init_params(kp, d_model)
    y_ref = reference(x, w1_t, b1, w2_t, b2)

    # f32 MXU path: bit-faithful to the PyTorch f32 module.
    y = jax.block_until_ready(residual_block(x, w1_t, b1, w2_t, b2))
    assert y.shape == (batch, seq, d_model)
    assert jnp.allclose(y, y_ref, atol=1e-5, rtol=1e-5), "f32 path mismatch vs reference"

    # bf16 MXU operands (v6e/v7x perf config), f32 accumulation -> looser tolerance.
    y_bf16 = jax.block_until_ready(
        residual_block(x, w1_t, b1, w2_t, b2, use_bf16_mxu=True))
    assert jnp.allclose(y_bf16, y_ref, atol=1e-1, rtol=1e-1), "bf16 path drifted too far"

    # Exercise M padding + multi-step grid (M=120 -> Mp=128, grid=(2,)).
    b2_, s2_, d2_ = 3, 40, 128
    x_big = jax.random.normal(kx, (b2_, s2_, d2_), jnp.float32)
    p_big = init_params(kp, d2_)
    y_big = jax.block_until_ready(residual_block(x_big, *p_big, tm=64))
    assert jnp.allclose(y_big, reference(x_big, *p_big), atol=1e-4, rtol=1e-4), \
        "tiled/padded path mismatch vs reference"

    print("KERNEL_OK")
</pallas_src>

<mosaic_0001>
module attributes {stable_mosaic.version = 11 : i64} {
  func.func @residual_block_kernel(%arg0: i32, %arg1: memref<16x128xf32, #tpu.memory_space<vmem>>, %arg2: memref<128x128xf32, #tpu.memory_space<vmem>>, %arg3: memref<1x128xf32, #tpu.memory_space<vmem>>, %arg4: memref<128x128xf32, #tpu.memory_space<vmem>>, %arg5: memref<1x128xf32, #tpu.memory_space<vmem>>, %arg6: memref<16x128xf32, #tpu.memory_space<vmem>>) attributes {dimension_semantics = [#tpu.dimension_semantics<parallel>], iteration_bounds = array<i64: 1>, scalar_prefetch = 0 : i64, scratch_operands = 0 : i64, tpu.core_type = #tpu.core_type<tc>, window_params = [{transform_indices = @transform_0, window_bounds = array<i64: 16, 128>}, {pipeline_mode = #tpu.pipeline_mode<synchronous>, transform_indices = @transform_1, window_bounds = array<i64: 128, 128>}, {pipeline_mode = #tpu.pipeline_mode<synchronous>, transform_indices = @transform_2, window_bounds = array<i64: 1, 128>}, {pipeline_mode = #tpu.pipeline_mode<synchronous>, transform_indices = @transform_3, window_bounds = array<i64: 128, 128>}, {pipeline_mode = #tpu.pipeline_mode<synchronous>, transform_indices = @transform_4, window_bounds = array<i64: 1, 128>}, {transform_indices = @transform_5, window_bounds = array<i64: 16, 128>}]} {
    %c0 = arith.constant 0 : index
    %c0_0 = arith.constant 0 : index
    %0 = vector.load %arg1[%c0, %c0_0] : memref<16x128xf32, #tpu.memory_space<vmem>>, vector<16x128xf32>
    %c0_1 = arith.constant 0 : index
    %c0_2 = arith.constant 0 : index
    %1 = vector.load %arg2[%c0_1, %c0_2] : memref<128x128xf32, #tpu.memory_space<vmem>>, vector<128x128xf32>
    %cst = arith.constant dense<0.000000e+00> : vector<16x128xf32>
    %2 = tpu.matmul %0, %1, %cst {dimension_numbers = #tpu.dot_dimension_numbers<[1], [0], [0], [1], [0, 0, 1, 1], [], []>} : vector<16x128xf32>, vector<128x128xf32>, vector<16x128xf32> -> vector<16x128xf32>
    %c0_3 = arith.constant 0 : index
    %c0_4 = arith.constant 0 : index
    %3 = vector.load %arg3[%c0_3, %c0_4] : memref<1x128xf32, #tpu.memory_space<vmem>>, vector<1x128xf32>
    %4 = vector.broadcast %3 : vector<1x128xf32> to vector<16x128xf32>
    %5 = arith.addf %2, %4 : vector<16x128xf32>
    %cst_5 = arith.constant 0.000000e+00 : f32
    %6 = vector.broadcast %cst_5 : f32 to vector<16x128xf32>
    %7 = arith.maximumf %5, %6 : vector<16x128xf32>
    %c0_6 = arith.constant 0 : index
    %c0_7 = arith.constant 0 : index
    %8 = vector.load %arg4[%c0_6, %c0_7] : memref<128x128xf32, #tpu.memory_space<vmem>>, vector<128x128xf32>
    %cst_8 = arith.constant dense<0.000000e+00> : vector<16x128xf32>
    %9 = tpu.matmul %7, %8, %cst_8 {dimension_numbers = #tpu.dot_dimension_numbers<[1], [0], [0], [1], [0, 0, 1, 1], [], []>} : vector<16x128xf32>, vector<128x128xf32>, vector<16x128xf32> -> vector<16x128xf32>
    %c0_9 = arith.constant 0 : index
    %c0_10 = arith.constant 0 : index
    %10 = vector.load %arg5[%c0_9, %c0_10] : memref<1x128xf32, #tpu.memory_space<vmem>>, vector<1x128xf32>
    %11 = vector.broadcast %10 : vector<1x128xf32> to vector<16x128xf32>
    %12 = arith.addf %9, %11 : vector<16x128xf32>
    %cst_11 = arith.constant 0.000000e+00 : f32
    %13 = vector.broadcast %cst_11 : f32 to vector<16x128xf32>
    %14 = arith.maximumf %12, %13 : vector<16x128xf32>
    %15 = arith.addf %0, %14 : vector<16x128xf32>
    %c0_12 = arith.constant 0 : index
    %c0_13 = arith.constant 0 : index
    %16 = vector.load %arg6[%c0_12, %c0_13] : memref<16x128xf32, #tpu.memory_space<vmem>>, vector<16x128xf32>
    tpu.vector_store %arg6[%c0_12, %c0_13], %15 {strides = array<i32>} : memref<16x128xf32, #tpu.memory_space<vmem>>, vector<16x128xf32>,
    return
  }
  func.func @transform_0(%arg0: i32) -> (i32, i32) {
    %c0_i32 = arith.constant 0 : i32
    %c0_i32_0 = arith.constant 0 : i32
    return %arg0, %c0_i32 : i32, i32
  }
  func.func @transform_1(%arg0: i32) -> (i32, i32) {
    %c0_i32 = arith.constant 0 : i32
    %c0_i32_0 = arith.constant 0 : i32
    %c0_i32_1 = arith.constant 0 : i32
    return %c0_i32, %c0_i32_0 : i32, i32
  }
  func.func @transform_2(%arg0: i32) -> (i32, i32) {
    %c0_i32 = arith.constant 0 : i32
    %c0_i32_0 = arith.constant 0 : i32
    %c0_i32_1 = arith.constant 0 : i32
    return %c0_i32, %c0_i32_0 : i32, i32
  }
  func.func @transform_3(%arg0: i32) -> (i32, i32) {
    %c0_i32 = arith.constant 0 : i32
    %c0_i32_0 = arith.constant 0 : i32
    %c0_i32_1 = arith.constant 0 : i32
    return %c0_i32, %c0_i32_0 : i32, i32
  }
  func.func @transform_4(%arg0: i32) -> (i32, i32) {
    %c0_i32 = arith.constant 0 : i32
    %c0_i32_0 = arith.constant 0 : i32
    %c0_i32_1 = arith.constant 0 : i32
    return %c0_i32, %c0_i32_0 : i32, i32
  }
  func.func @transform_5(%arg0: i32) -> (i32, i32) {
    %c0_i32 = arith.constant 0 : i32
    %c0_i32_0 = arith.constant 0 : i32
    return %arg0, %c0_i32 : i32, i32
  }
}

</mosaic_0001>

<bundles_post_ra>
// kernel: tpu_custom_call.1
= control target key start
LH: loop header
LB: loop body
LE: loop exit
PB: predicated region body
PF: predicated region fallthrough
CT: control target
= control target key end

     0   :  { %10 = vsyncpa [#allocation3], 0  ;;  %s392_s0 = inlined_call_operand.hbm [shape: f32[16,128], index: 0, kind: input, shape index: {}]   ;;  %s393_s1 = inlined_call_operand.hbm [shape: f32[128,128], index: 1, kind: input, shape index: {}]   ;;  %s394_s2 = inlined_call_operand.vmem [shape: f32[1,128], index: 2, kind: input, shape index: {}]   ;;  %s395_s3 = inlined_call_operand.hbm [shape: f32[128,128], index: 3, kind: input, shape index: {}]   ;;  %s396_s4 = inlined_call_operand.vmem [shape: f32[1,128], index: 4, kind: input, shape index: {}]   ;;  %s397_s5 = inlined_call_operand.hbm [shape: f32[16,128], index: 5, kind: output, shape index: {}]  }
   0x1   :  { %11 = vsyncpa [#allocation6], 0 }
   0x2   :  { %12 = vsyncpa [#allocation4], 0  ;;  %s30_s20 = sshll.u32 %s393_s1, 4  ;;  %s326_s21 = smov [#allocation5]   ;;  %s31_s20 = int_to_ptr.hbm [resolvable:$true] %s30_s20 }
   0x3   :  { %s32_s22 = sshll.u32 %s326_s21, 4  ;;  %s17_s25 = sshll.u32 %s392_s0, 4  ;;  %s33_s22 = int_to_ptr.vmem [resolvable:$true] %s32_s22  ;;  %s18_s25 = int_to_ptr.hbm [resolvable:$true] %s17_s25 }
   0x4   :  { %s327_s26 = smov 128   ;;  %s328_s27 = smov 8  }
   0x5   :  { %38 = dma.hbm_to_vmem [thread:$0]  %s31_s20, 2048, %s33_s22, [#allocation6], %s327_s26, %s327_s26, %s328_s27  }
   0x6   :  { %s329_s28 = smov [#allocation2]   ;;  %s45_s1 = sshll.u32 %s395_s3, 4  ;;  %s46_s1 = int_to_ptr.hbm [resolvable:$true] %s45_s1 }
   0x7   :  { %s19_s29 = sshll.u32 %s329_s28, 4  ;;  %s330_s0 = smov [#allocation7]   ;;  %s20_s29 = int_to_ptr.vmem [resolvable:$true] %s19_s29 }
   0x8   :  { %25 = dma.hbm_to_vmem [thread:$0]  %s18_s25, 256, %s20_s29, [#allocation3], %s327_s26, %s327_s26, %s328_s27  }
   0x9   :  { %s47_s7 = sshll.u32 %s330_s0, 4  ;;  %s48_s7 = int_to_ptr.vmem [resolvable:$true] %s47_s7 }
   0xa   :  { %53 = dma.hbm_to_vmem [thread:$0]  %s46_s1, 2048, %s48_s7, [#allocation6], %s327_s26, %s327_s26, %s328_s27  }
   0xb   :  { %320 = dma.done.wait [#allocation3], 256  }
   0xc   :  { %321 = vsyncadd [#allocation3], 4294967040 }
   0xd   :  { %322 = dma.done.wait [#allocation6], 4096  }
   0xe   :  { %323 = vsyncadd [#allocation6], 4294963200  ;;  %v85_v0 = vld [vmem:[#allocation5 + $0x78] sm:$0xff]  ;;  %v84_v1 = vld [vmem:[#allocation5 + $0x70] sm:$0xff]  ;;  %s170_s14 = sshll.u32 %s397_s5, 4  ;;  %s171_s14 = int_to_ptr.hbm [resolvable:$true] %s170_s14 }
   0xf   :  { %184 = vmatpush.msra.mxu2 %v85_v0  ;;  %90 = vmatpush.msra.mxu0 %v85_v0  ;;  %v83_v2 = vld [vmem:[#allocation5 + $0x68] sm:$0xff]  ;;  %v82_v3 = vld [vmem:[#allocation5 + $0x60] sm:$0xff]  ;;  %v81_v4 = vld [vmem:[#allocation5 + $0x58] sm:$0xff] }
  0x10   :  { %v130_v5 = vld [vmem:[#allocation7 + $0x78] sm:$0xff]  ;;  %v129_v6 = vld [vmem:[#allocation7 + $0x70] sm:$0xff]  ;;  %v128_v8 = vld [vmem:[#allocation7 + $0x68] sm:$0xff] }
  0x11   :  { %185 = vmatpush.msra.mxu2 %v84_v1  ;;  %91 = vmatpush.msra.mxu0 %v84_v1  ;;  %v80_v7 = vld [vmem:[#allocation5 + $0x50] sm:$0xff]  ;;  %v79_v9 = vld [vmem:[#allocation5 + $0x48] sm:$0xff]  ;;  %v127_v10 = vld [vmem:[#allocation7 + $0x60] sm:$0xff] }
  0x12   :  { %200 = vmatpush.msra.mxu3 %v130_v5  ;;  %135 = vmatpush.msra.mxu1 %v130_v5  ;;  %v78_v11 = vld [vmem:[#allocation5 + $0x40] sm:$0xff]  ;;  %v126_v12 = vld [vmem:[#allocation7 + $0x58] sm:$0xff]  ;;  %v125_v14 = vld [vmem:[#allocation7 + $0x50] sm:$0xff] }
  0x13   :  { %186 = vmatpush.msra.mxu2 %v83_v2  ;;  %92 = vmatpush.msra.mxu0 %v83_v2  ;;  %v77_v13 = vld [vmem:[#allocation5 + $0x38] sm:$0xff]  ;;  %v76_v15 = vld [vmem:[#allocation5 + $0x30] sm:$0xff]  ;;  %v124_v16 = vld [vmem:[#allocation7 + $0x48] sm:$0xff] }
  0x14   :  { %201 = vmatpush.msra.mxu3 %v129_v6  ;;  %136 = vmatpush.msra.mxu1 %v129_v6  ;;  %v75_v17 = vld [vmem:[#allocation5 + $0x28] sm:$0xff]  ;;  %v123_v18 = vld [vmem:[#allocation7 + $0x40] sm:$0xff]  ;;  %v122_v20 = vld [vmem:[#allocation7 + $0x38] sm:$0xff] }
  0x15   :  { %187 = vmatpush.msra.mxu2 %v82_v3  ;;  %93 = vmatpush.msra.mxu0 %v82_v3  ;;  %v74_v19 = vld [vmem:[#allocation5 + $0x20] sm:$0xff]  ;;  %v73_v21 = vld [vmem:[#allocation5 + $0x18] sm:$0xff]  ;;  %v121_v22 = vld [vmem:[#allocation7 + $0x30] sm:$0xff] }
  0x16   :  { %202 = vmatpush.msra.mxu3 %v128_v8  ;;  %137 = vmatpush.msra.mxu1 %v128_v8  ;;  %v72_v23 = vld [vmem:[#allocation5 + $0x10] sm:$0xff]  ;;  %v120_v24 = vld [vmem:[#allocation7 + $0x28] sm:$0xff]  ;;  %v119_v26 = vld [vmem:[#allocation7 + $0x20] sm:$0xff] }
  0x17   :  { %188 = vmatpush.msra.mxu2 %v81_v4  ;;  %94 = vmatpush.msra.mxu0 %v81_v4  ;;  %v71_v25 = vld [vmem:[#allocation5 + $0x8] sm:$0xff]  ;;  %v70_v27 = vld [vmem:[#allocation5] sm:$0xff]  ;;  %v69_v28 = vld [vmem:[#allocation2 + $0x8] sm:$0xff] }
  0x18   :  { %203 = vmatpush.msra.mxu3 %v127_v10  ;;  %138 = vmatpush.msra.mxu1 %v127_v10  ;;  %v68_v29 = vld [vmem:[#allocation2] sm:$0xff]  ;;  %v118_v30 = vld [vmem:[#allocation7 + $0x18] sm:$0xff]  ;;  %v116_v32 = vld [vmem:[#allocation7 + $0x8] sm:$0xff] }
  0x19   :  { %189 = vmatpush.msra.mxu2 %v80_v7  ;;  %95 = vmatpush.msra.mxu0 %v80_v7  ;;  %v117_v31 = vld [vmem:[#allocation7 + $0x10] sm:$0xff]  ;;  %v115_v33 = vld [vmem:[#allocation7] sm:$0xff] }
  0x1a   :  { %204 = vmatpush.msra.mxu3 %v126_v12  ;;  %139 = vmatpush.msra.mxu1 %v126_v12  ;;  %v222_v34 = vld [vmem:[%s394_s2] ss:$0 sm:$0xff]  ;;  %s331_s2 = smov [#allocation8]  }
  0x1b   :  { %190 = vmatpush.msra.mxu2 %v79_v9  ;;  %96 = vmatpush.msra.mxu0 %v79_v9  ;;  %v223_v41 = vld [vmem:[%s396_s4] ss:$0 sm:$0xff]  ;;  %s168_s11 = sshll.u32 %s331_s2, 4  ;;  %s169_s11 = int_to_ptr.vmem [resolvable:$true] %s168_s11 }
  0x1c   :  { %205 = vmatpush.msra.mxu3 %v125_v14  ;;  %140 = vmatpush.msra.mxu1 %v125_v14 }
  0x1d   :  { %191 = vmatpush.msra.mxu2 %v78_v11  ;;  %97 = vmatpush.msra.mxu0 %v78_v11 }
  0x1e   :  { %206 = vmatpush.msra.mxu3 %v124_v16  ;;  %141 = vmatpush.msra.mxu1 %v124_v16 }
  0x1f   :  { %192 = vmatpush.msra.mxu2 %v77_v13  ;;  %98 = vmatpush.msra.mxu0 %v77_v13 }
  0x20   :  { %207 = vmatpush.msra.mxu3 %v123_v18  ;;  %142 = vmatpush.msra.mxu1 %v123_v18 }
  0x21   :  { %193 = vmatpush.msra.mxu2 %v76_v15  ;;  %99 = vmatpush.msra.mxu0 %v76_v15 }
  0x22   :  { %208 = vmatpush.msra.mxu3 %v122_v20  ;;  %143 = vmatpush.msra.mxu1 %v122_v20 }
  0x23   :  { %194 = vmatpush.msra.mxu2 %v75_v17  ;;  %100 = vmatpush.msra.mxu0 %v75_v17 }
  0x24   :  { %209 = vmatpush.msra.mxu3 %v121_v22  ;;  %144 = vmatpush.msra.mxu1 %v121_v22 }
  0x25   :  { %195 = vmatpush.msra.mxu2 %v74_v19  ;;  %101 = vmatpush.msra.mxu0 %v74_v19 }
  0x26   :  { %210 = vmatpush.msra.mxu3 %v120_v24  ;;  %145 = vmatpush.msra.mxu1 %v120_v24 }
  0x27   :  { %196 = vmatpush.msra.mxu2 %v73_v21  ;;  %102 = vmatpush.msra.mxu0 %v73_v21 }
  0x28   :  { %211 = vmatpush.msra.mxu3 %v119_v26  ;;  %146 = vmatpush.msra.mxu1 %v119_v26 }
  0x29   :  { %197 = vmatpush.msra.mxu2 %v72_v23  ;;  %103 = vmatpush.msra.mxu0 %v72_v23 }
  0x2a   :  { %212 = vmatpush.msra.mxu3 %v118_v30  ;;  %147 = vmatpush.msra.mxu1 %v118_v30 }
  0x2b   :  { %198 = vmatpush.msra.mxu2 %v71_v25  ;;  %104 = vmatpush.msra.mxu0 %v71_v25 }
  0x2c   :  { %213 = vmatpush.msra.mxu3 %v117_v31  ;;  %148 = vmatpush.msra.mxu1 %v117_v31 }
  0x2d   :  { %199 = vmatpush.msra.mxu2 %v70_v27  ;;  %105 = vmatpush.msra.mxu0 %v70_v27 }
  0x2e   :  { %109 = vmatmul.f32.vlgmr.msra.gmra.mxu2 %v69_v28  ;;  %106 = vmatmul.f32.vlgmr.msra.gmra.mxu0 %v68_v29 }
  0x2f   :  { %214 = vmatpush.msra.mxu3 %v116_v32  ;;  %149 = vmatpush.msra.mxu1 %v116_v32 }
  0x31   :  { %215 = vmatpush.msra.mxu3 %v115_v33  ;;  %150 = vmatpush.msra.mxu1 %v115_v33 }
  0xab   :  { %v107_v35 = vpop.f32.mrf.mxu0 }
  0xac   :  { %v108_v36 = vadd.f32 %v222_v34, %v107_v35 }
  0xae   :  { %v113_v37 = vmax.f32 %v108_v36, 0.0 }
  0xb0   :  { %151 = vmatmul.f32.vlgmr.msra.gmra.mxu1 %v113_v37 }
  0xb1   :  { %v110_v38 = vpop.f32.mrf.mxu2 }
  0xb2   :  { %v111_v39 = vadd.f32 %v222_v34, %v110_v38 }
  0xb4   :  { %v114_v40 = vmax.f32 %v111_v39, 0.0 }
  0xb6   :  { %154 = vmatmul.f32.vlgmr.msra.gmra.mxu3 %v114_v40 }
 0x12d   :  { %v152_v42 = vpop.f32.mrf.mxu1 }
 0x12e   :  { %v153_v43 = vadd.f32 %v223_v41, %v152_v42 }
 0x130   :  { %v158_v44 = vmax.f32 %v153_v43, 0.0 }
 0x132   :  { %v160_v45 = vadd.f32 %v158_v44, %v68_v29 }
 0x134   :  { %162 = vst [vmem:[#allocation8] sm:$0xff] %v160_v45 }
 0x139   :  { %v155_v46 = vpop.f32.mrf.mxu3 }
 0x13a   :  { %v156_v47 = vadd.f32 %v223_v41, %v155_v46 }
 0x13c   :  { %v159_v48 = vmax.f32 %v156_v47, 0.0 }
 0x13e   :  { %v161_v49 = vadd.f32 %v159_v48, %v69_v28 }
 0x140   :  { %163 = vst [vmem:[#allocation8 + $0x8] sm:$0xff] %v161_v49 }
 0x141   :  { %176 = dma.vmem_to_hbm [thread:$0]  %s169_s11, 256, %s171_s14, [#allocation4], %s327_s26, %s327_s26, %s328_s27  }
 0x142   :  { %324 = dma.done.wait [#allocation4], 256  }
 0x143   :  { %325 = vsyncadd [#allocation4], 4294967040 }
 0x144   :  { %181 = vsyncpa [#allocation3], 1 }
 0x145   :  { %182 = vsyncpa [#allocation6], 1 }
 0x146   :  { %183 = vsyncpa [#allocation4], 1 }

</bundles_post_ra>
